<compile_context>
chip_gen: v7x
topology: tpu7x:2x2x1
jax: 0.10.0
libtpu: 0.0.40
codegen_flags: <defaults>
</compile_context>

<pallas_src>
import functools

import jax
import jax.numpy as jnp
from jax.experimental import pallas as pl
from jax.experimental.pallas import tpu as pltpu

LANES = 128
SUBLANES = 8
MAX_TILE_ROWS = 2048  # 2048*128*4B = 1 MiB per input tile


def _bce_partial(p_ref, t_ref, weight):
    """BCE loss of one lane-dense tile, scaled by `weight`, folded to (8,128)."""
    p = p_ref[...].astype(jnp.float32)
    t = t_ref[...].astype(jnp.float32)
    # Mirror torch.nn.functional.binary_cross_entropy: clamp each log at -100.
    log_p = jnp.maximum(jnp.log(p), -100.0)
    log_1mp = jnp.maximum(jnp.log(1.0 - p), -100.0)
    loss = -(t * log_p + (1.0 - t) * log_1mp) * jnp.float32(weight)
    rows = loss.shape[0]
    # (rows,128) -> (8,128): leading-axis sum = pure elementwise vreg adds
    # (no XLU cross-lane reduce, no scalar RMW); reshape stays on (8,128) tiles.
    return loss.reshape(rows // SUBLANES, SUBLANES, LANES).sum(axis=0)


def _fused_bce_kernel(p_l_ref, t_l_ref, p_g_ref, t_g_ref, out_ref, *,
                      n_local_tiles, w_local, w_global):
    """Grid steps [0, n_local_tiles) process the 'local' BCE term; the remaining
    steps process the 'global' term.  Each step writes one (8,128) partial."""
    i = pl.program_id(0)

    @pl.when(i < n_local_tiles)
    def _():
        out_ref[...] = _bce_partial(p_l_ref, t_l_ref, w_local)

    @pl.when(i >= n_local_tiles)
    def _():
        out_ref[...] = _bce_partial(p_g_ref, t_g_ref, w_global)


def _pick_tiling(n_elems):
    """Pick (tile_rows, n_tiles): tile_rows multiple of 8, <= MAX_TILE_ROWS,
    tiles balanced so padding never exceeds ~one sublane row per tile."""
    rows_total = pl.cdiv(max(int(n_elems), 1), LANES)
    rows_total = pl.cdiv(rows_total, SUBLANES) * SUBLANES
    n_tiles = pl.cdiv(rows_total, MAX_TILE_ROWS)
    rows = pl.cdiv(pl.cdiv(rows_total, n_tiles), SUBLANES) * SUBLANES
    rows = max(rows, SUBLANES)
    return rows, n_tiles


def _flatten_pad(pred, truth, tile_rows, n_tiles):
    """Flatten to 1D, pad to n_tiles*(tile_rows*128) elements with values that
    contribute exactly zero loss (pred=1, truth=1), reshape lane-dense."""
    p = pred.reshape(-1)
    t = truth.reshape(-1)
    n = p.shape[0]
    pad = n_tiles * tile_rows * LANES - n
    if pad:
        p = jnp.pad(p, (0, pad), constant_values=1.0)
        t = jnp.pad(t, (0, pad), constant_values=1.0)
    return (p.reshape(n_tiles * tile_rows, LANES),
            t.reshape(n_tiles * tile_rows, LANES))


def ecpn_loss_pallas(y_local, y_global, y_truth, n_last):
    """Fused equivalent of:
       F.binary_cross_entropy(y_local, y_truth)
     + F.binary_cross_entropy(y_global, y_truth[:, -n_last:])"""
    B, L = y_local.shape
    assert y_truth.shape == (B, L)
    assert y_global.shape == (B, n_last)

    # TODO(synk): the global truth columns are re-materialized from HBM (strided
    # slice) instead of reused from the resident local tile; the lane-dense
    # flattening trades that small re-read for full vector-width utilization.
    t_global = y_truth[:, -n_last:]

    n_local_elems = B * L
    n_global_elems = B * n_last
    rows_l, n_local_tiles = _pick_tiling(n_local_elems)
    rows_g, n_global_tiles = _pick_tiling(n_global_elems)

    p_l, t_l = _flatten_pad(y_local, y_truth, rows_l, n_local_tiles)
    p_g, t_g = _flatten_pad(y_global, t_global, rows_g, n_global_tiles)

    n_tiles = n_local_tiles + n_global_tiles

    kernel = functools.partial(
        _fused_bce_kernel,
        n_local_tiles=n_local_tiles,
        w_local=1.0 / float(n_local_elems),
        w_global=1.0 / float(n_global_elems),
    )

    # Index maps: during the "other" segment's phase, keep the block index pinned
    # (clamped) so the pipeline sees an unchanged index and skips the DMA.
    last_local = n_local_tiles - 1
    local_map = lambda i: (jnp.minimum(i, last_local), 0)
    global_map = lambda i: (jnp.maximum(i - n_local_tiles, 0), 0)

    total_elems = (n_local_tiles * rows_l + n_global_tiles * rows_g) * LANES
    itemsize = jnp.dtype(jnp.float32).itemsize
    cost = pl.CostEstimate(
        flops=6 * total_elems,
        transcendentals=2 * total_elems,
        bytes_accessed=(2 * total_elems + n_tiles * SUBLANES * LANES) * itemsize,
    )

    partials = pl.pallas_call(
        kernel,
        out_shape=jax.ShapeDtypeStruct((n_tiles * SUBLANES, LANES), jnp.float32),
        grid_spec=pltpu.PrefetchScalarGridSpec(
            num_scalar_prefetch=0,
            grid=(n_tiles,),
            in_specs=[
                pl.BlockSpec((rows_l, LANES), local_map),
                pl.BlockSpec((rows_l, LANES), local_map),
                pl.BlockSpec((rows_g, LANES), global_map),
                pl.BlockSpec((rows_g, LANES), global_map),
            ],
            out_specs=pl.BlockSpec((SUBLANES, LANES), lambda i: (i, 0)),
        ),
        compiler_params=pltpu.CompilerParams(
            dimension_semantics=("parallel",)),
        cost_estimate=cost,
    )(p_l, t_l, p_g, t_g)

    # Single tiny final reduction over (n_tiles*8, 128) partials.
    return jnp.sum(partials)


class LossPallas:
    """JAX/Pallas port of model/ECPN.py::Loss (no learnable parameters)."""

    def __init__(self, config):
        self.label = config["labels"]

    def __call__(self, y_pred, y_truth):
        y_local = y_pred["local"]
        y_global = y_pred["global"]
        n_last = self.label[-1]
        return ecpn_loss_pallas(y_local, y_global, y_truth, n_last)


def _bce_ref(p, t):
    lp = jnp.maximum(jnp.log(p), -100.0)
    l1p = jnp.maximum(jnp.log(1.0 - p), -100.0)
    return jnp.mean(-(t * lp + (1.0 - t) * l1p))


def _run_case(key, config, B):
    k1, k2, k3 = jax.random.split(key, 3)
    L_total = sum(config["labels"])
    L_last = config["labels"][-1]

    # Predictions are probabilities in (0, 1) (post-sigmoid), truth is {0, 1}.
    y_local = jax.nn.sigmoid(jax.random.normal(k1, (B, L_total), dtype=jnp.float32))
    y_global = jax.nn.sigmoid(jax.random.normal(k2, (B, L_last), dtype=jnp.float32))
    y_truth = (jax.random.uniform(k3, (B, L_total)) > 0.5).astype(jnp.float32)

    loss_mod = LossPallas(config)
    out = loss_mod({"local": y_local, "global": y_global}, y_truth)
    out = jax.block_until_ready(out)

    ref = _bce_ref(y_local, y_truth) + _bce_ref(y_global, y_truth[:, -L_last:])
    assert jnp.allclose(out, ref, rtol=1e-5, atol=1e-5), (out, ref)


if __name__ == "__main__":
    key = jax.random.PRNGKey(0)
    k_small, k_multi = jax.random.split(key)

    # Small shapes: hierarchical label config with two levels (16 coarse + 8 fine).
    _run_case(k_small, {"labels": [16, 8]}, B=8)

    # Multi-tile path: local segment spans 2 tiles, exercising the clamped maps.
    _run_case(k_multi, {"labels": [2048, 1024, 512, 256]}, B=96)

    print("KERNEL_OK")
</pallas_src>

<mosaic_0001>
module attributes {stable_mosaic.version = 11 : i64} {
  func.func @_fused_bce_kernel(%arg0: i32, %arg1: memref<8x128xf32, #tpu.memory_space<vmem>>, %arg2: memref<8x128xf32, #tpu.memory_space<vmem>>, %arg3: memref<8x128xf32, #tpu.memory_space<vmem>>, %arg4: memref<8x128xf32, #tpu.memory_space<vmem>>, %arg5: memref<8x128xf32, #tpu.memory_space<vmem>>) attributes {dimension_semantics = [#tpu.dimension_semantics<parallel>], iteration_bounds = array<i64: 2>, scalar_prefetch = 0 : i64, scratch_operands = 0 : i64, tpu.core_type = #tpu.core_type<tc>, window_params = [{transform_indices = @transform_0, window_bounds = array<i64: 8, 128>}, {transform_indices = @transform_1, window_bounds = array<i64: 8, 128>}, {transform_indices = @transform_2, window_bounds = array<i64: 8, 128>}, {transform_indices = @transform_3, window_bounds = array<i64: 8, 128>}, {transform_indices = @transform_4, window_bounds = array<i64: 8, 128>}]} {
    %c1_i32 = arith.constant 1 : i32
    %0 = arith.cmpi slt, %arg0, %c1_i32 : i32
    %1 = arith.extui %0 : i1 to i32
    %c0_i32 = arith.constant 0 : i32
    %2 = arith.cmpi ne, %1, %c0_i32 : i32
    scf.if %2 {
      %c0 = arith.constant 0 : index
      %c0_2 = arith.constant 0 : index
      %6 = vector.load %arg1[%c0, %c0_2] : memref<8x128xf32, #tpu.memory_space<vmem>>, vector<8x128xf32>
      %c0_3 = arith.constant 0 : index
      %c0_4 = arith.constant 0 : index
      %7 = vector.load %arg2[%c0_3, %c0_4] : memref<8x128xf32, #tpu.memory_space<vmem>>, vector<8x128xf32>
      %8 = math.log %6 : vector<8x128xf32>
      %cst = arith.constant -1.000000e+02 : f32
      %9 = vector.broadcast %cst : f32 to vector<8x128xf32>
      %10 = arith.maximumf %8, %9 : vector<8x128xf32>
      %cst_5 = arith.constant 1.000000e+00 : f32
      %11 = vector.broadcast %cst_5 : f32 to vector<8x128xf32>
      %12 = arith.subf %11, %6 : vector<8x128xf32>
      %13 = math.log %12 : vector<8x128xf32>
      %cst_6 = arith.constant -1.000000e+02 : f32
      %14 = vector.broadcast %cst_6 : f32 to vector<8x128xf32>
      %15 = arith.maximumf %13, %14 : vector<8x128xf32>
      %16 = arith.mulf %7, %10 : vector<8x128xf32>
      %cst_7 = arith.constant 1.000000e+00 : f32
      %17 = vector.broadcast %cst_7 : f32 to vector<8x128xf32>
      %18 = arith.subf %17, %7 : vector<8x128xf32>
      %19 = arith.mulf %18, %15 : vector<8x128xf32>
      %20 = arith.addf %16, %19 : vector<8x128xf32>
      %cst_8 = arith.constant 0.000000e+00 : f32
      %21 = vector.broadcast %cst_8 : f32 to vector<8x128xf32>
      %22 = arith.subf %21, %20 : vector<8x128xf32>
      %cst_9 = arith.constant 0.00520833349 : f32
      %23 = vector.broadcast %cst_9 : f32 to vector<8x128xf32>
      %24 = arith.mulf %22, %23 : vector<8x128xf32>
      %25 = vector.shape_cast %24 : vector<8x128xf32> to vector<1x8x128xf32>
      %cst_10 = arith.constant dense<0.000000e+00> : vector<8x128xf32>
      %26 = vector.multi_reduction <add>, %25, %cst_10 [0] : vector<1x8x128xf32> to vector<8x128xf32>
      %c0_11 = arith.constant 0 : index
      %c0_12 = arith.constant 0 : index
      %27 = vector.load %arg5[%c0_11, %c0_12] : memref<8x128xf32, #tpu.memory_space<vmem>>, vector<8x128xf32>
      tpu.vector_store %arg5[%c0_11, %c0_12], %26 {strides = array<i32>} : memref<8x128xf32, #tpu.memory_space<vmem>>, vector<8x128xf32>,
    } else {
    }
    %c1_i32_0 = arith.constant 1 : i32
    %3 = arith.cmpi sge, %arg0, %c1_i32_0 : i32
    %4 = arith.extui %3 : i1 to i32
    %c0_i32_1 = arith.constant 0 : i32
    %5 = arith.cmpi ne, %4, %c0_i32_1 : i32
    scf.if %5 {
      %c0 = arith.constant 0 : index
      %c0_2 = arith.constant 0 : index
      %6 = vector.load %arg3[%c0, %c0_2] : memref<8x128xf32, #tpu.memory_space<vmem>>, vector<8x128xf32>
      %c0_3 = arith.constant 0 : index
      %c0_4 = arith.constant 0 : index
      %7 = vector.load %arg4[%c0_3, %c0_4] : memref<8x128xf32, #tpu.memory_space<vmem>>, vector<8x128xf32>
      %8 = math.log %6 : vector<8x128xf32>
      %cst = arith.constant -1.000000e+02 : f32
      %9 = vector.broadcast %cst : f32 to vector<8x128xf32>
      %10 = arith.maximumf %8, %9 : vector<8x128xf32>
      %cst_5 = arith.constant 1.000000e+00 : f32
      %11 = vector.broadcast %cst_5 : f32 to vector<8x128xf32>
      %12 = arith.subf %11, %6 : vector<8x128xf32>
      %13 = math.log %12 : vector<8x128xf32>
      %cst_6 = arith.constant -1.000000e+02 : f32
      %14 = vector.broadcast %cst_6 : f32 to vector<8x128xf32>
      %15 = arith.maximumf %13, %14 : vector<8x128xf32>
      %16 = arith.mulf %7, %10 : vector<8x128xf32>
      %cst_7 = arith.constant 1.000000e+00 : f32
      %17 = vector.broadcast %cst_7 : f32 to vector<8x128xf32>
      %18 = arith.subf %17, %7 : vector<8x128xf32>
      %19 = arith.mulf %18, %15 : vector<8x128xf32>
      %20 = arith.addf %16, %19 : vector<8x128xf32>
      %cst_8 = arith.constant 0.000000e+00 : f32
      %21 = vector.broadcast %cst_8 : f32 to vector<8x128xf32>
      %22 = arith.subf %21, %20 : vector<8x128xf32>
      %cst_9 = arith.constant 1.562500e-02 : f32
      %23 = vector.broadcast %cst_9 : f32 to vector<8x128xf32>
      %24 = arith.mulf %22, %23 : vector<8x128xf32>
      %25 = vector.shape_cast %24 : vector<8x128xf32> to vector<1x8x128xf32>
      %cst_10 = arith.constant dense<0.000000e+00> : vector<8x128xf32>
      %26 = vector.multi_reduction <add>, %25, %cst_10 [0] : vector<1x8x128xf32> to vector<8x128xf32>
      %c0_11 = arith.constant 0 : index
      %c0_12 = arith.constant 0 : index
      %27 = vector.load %arg5[%c0_11, %c0_12] : memref<8x128xf32, #tpu.memory_space<vmem>>, vector<8x128xf32>
      tpu.vector_store %arg5[%c0_11, %c0_12], %26 {strides = array<i32>} : memref<8x128xf32, #tpu.memory_space<vmem>>, vector<8x128xf32>,
    } else {
    }
    return
  }
  func.func @transform_0(%arg0: i32) -> (i32, i32) {
    %c0_i32 = arith.constant 0 : i32
    %0 = arith.minsi %arg0, %c0_i32 : i32
    %c0_i32_0 = arith.constant 0 : i32
    %c0_i32_1 = arith.constant 0 : i32
    return %0, %c0_i32_0 : i32, i32
  }
  func.func @transform_1(%arg0: i32) -> (i32, i32) {
    %c0_i32 = arith.constant 0 : i32
    %0 = arith.minsi %arg0, %c0_i32 : i32
    %c0_i32_0 = arith.constant 0 : i32
    %c0_i32_1 = arith.constant 0 : i32
    return %0, %c0_i32_0 : i32, i32
  }
  func.func @transform_2(%arg0: i32) -> (i32, i32) {
    %c1_i32 = arith.constant 1 : i32
    %0 = arith.subi %arg0, %c1_i32 : i32
    %c0_i32 = arith.constant 0 : i32
    %1 = arith.maxsi %0, %c0_i32 : i32
    %c0_i32_0 = arith.constant 0 : i32
    %c0_i32_1 = arith.constant 0 : i32
    return %1, %c0_i32_0 : i32, i32
  }
  func.func @transform_3(%arg0: i32) -> (i32, i32) {
    %c1_i32 = arith.constant 1 : i32
    %0 = arith.subi %arg0, %c1_i32 : i32
    %c0_i32 = arith.constant 0 : i32
    %1 = arith.maxsi %0, %c0_i32 : i32
    %c0_i32_0 = arith.constant 0 : i32
    %c0_i32_1 = arith.constant 0 : i32
    return %1, %c0_i32_0 : i32, i32
  }
  func.func @transform_4(%arg0: i32) -> (i32, i32) {
    %c0_i32 = arith.constant 0 : i32
    %c0_i32_0 = arith.constant 0 : i32
    return %arg0, %c0_i32 : i32, i32
  }
}

</mosaic_0001>

<bundles_post_ra>
// kernel: tpu_custom_call.1
= control target key start
LH: loop header
LB: loop body
LE: loop exit
PB: predicated region body
PF: predicated region fallthrough
CT: control target
= control target key end

     0   :  { %s1277_s0 = inlined_call_operand.hbm [shape: f32[8,128], index: 0, kind: input, shape index: {}]   ;;  %s1278_s1 = inlined_call_operand.hbm [shape: f32[8,128], index: 1, kind: input, shape index: {}]   ;;  %s1279_s2 = inlined_call_operand.hbm [shape: f32[8,128], index: 2, kind: input, shape index: {}]   ;;  %s1280_s3 = inlined_call_operand.vmem [shape: f32[8,128], index: 3, kind: input, shape index: {}]   ;;  %s1281_s4 = inlined_call_operand.hbm [shape: f32[16,128], index: 4, kind: output, shape index: {}]  }
   0x1   :  { %1289 = sst [smem:[#allocation15_spill]] %s1277_s0 }
   0x2   :  { %1290 = sst [smem:[#allocation16_spill]] %s1278_s1 }
   0x3   :  { %9 = vsyncpa [#allocation3], 0 }
   0x4   :  { %11 = vsyncpa [#allocation3 + $0x1], 0 }
   0x5   :  { %12 = vsyncpa [#allocation6], 0 }
   0x6   :  { %14 = vsyncpa [#allocation6 + $0x1], 0 }
   0x7   :  { %15 = vsyncpa [#allocation4], 0 }
   0x8   :  { %17 = vsyncpa [#allocation4 + $0x1], 0  ;;  %s918_s15 = smov 0   ;;  %s920_s16 = smov 0  }
   0x9   :  { %s922_s17 = smov 0   ;;  %s924_s18 = smov 0  }
   0xa   :  { %s926_s19 = smov 0   ;;  %s928_s20 = smov 0  }
   0xb   :  { %s930_s21 = smov 0   ;;  %s932_s22 = smov 0  }
   0xc   :  { %s934_s23 = smov 0   ;;  %s936_s24 = smov 0  }
   0xd LB: > { %1291 = sst [smem:[#allocation13_spill]] %s883_s23  ;;  %s969_s25 = sadd.s32 1, %s887_s24   ;;  %s887_s24 = sphi %s936_s24, %s1326_s24   ;;  %s883_s23 = sphi %s934_s23, %s1317_s23   ;;  %s879_s22 = sphi %s932_s22, %s1325_s22   ;;  %s875_s21 = sphi %s930_s21, %s1324_s21   ;;  %s871_s20 = sphi %s928_s20, %s1323_s20   ;;  %s867_s19 = sphi %s926_s19, %s1322_s19   ;;  %s863_s18 = sphi %s924_s18, %s1321_s18   ;;  %s859_s17 = sphi %s922_s17, %s1320_s17   ;;  %s855_s16 = sphi %s920_s16, %s1319_s16   ;;  %s851_s15 = sphi %s918_s15, %s1318_s15  }
   0xe   : > { %p27_p0 = scmp.lt.s32.totalorder %s887_s24, 0  ;;  %p29_p1 = scmp.lt.s32.totalorder %s969_s25, 0 }
   0xf   : > { %s34_s26 = sadd.s32 1, %s883_s23  ;;  %p41_p2 = scmp.ne.s32.totalorder %s883_s23, %s879_s22 }
  0x10   : > { %s975_s27 = scalar_select %p27_p0, %s887_s24, 0 }
  0x11   : > { %s30_s28 = scalar_select %p29_p1, %s969_s25, 0 }
  0x12   : > { %p1285_p3 = scmp.eq.s32.totalorder %s887_s24, 0  ;;  %s151_s30 = ssub.s32 %s887_s24, %s969_s25 }
  0x13   : > { %s31_s29 = ssub.s32 %s975_s27, %s30_s28  ;;  %p992_p8 = scmp.eq.s32.totalorder %s151_s30, 0 }
  0x14   : > { %p32_p5 = scmp.eq.s32.totalorder %s31_s29, 0  ;;  %p43_p6 = por %p1285_p3, %p41_p2 }
  0x15   : > { %s1293_s6 = scalar_select %p992_p8, 1, 0 }
  0x16   : > { %s990_s5 = scalar_select %p32_p5, %s883_s23, %s34_s26  }
  0x17   : > { %p1284_p9 = scmp.lt.s32.totalorder %s887_s24, 2  ;;  %s1282_s7 = sand.u32 1, %s883_s23  }
  0x18   : > { %1292 = sst [smem:[#allocation14_spill]] %s990_s5  ;;  %s1283_s8 = sshll.u32 %s975_s27, 7 }
  0x19   : > { %s1001_s9 = sshll.u32 %s1282_s7, 3  ;;  %p1005_p10 = pnand %p1284_p9, %p43_p6 }
  0x1a   : > { %s211_s11 = sand.u32 1, %s887_s24   ;;  %s1295_s1 = sld [smem:[#allocation16_spill]] }
  0x1b   : > { %s215_s26 = scalar_lea.vmem [#allocation5], %s1001_s9  ;;  %s1021_s29 = scalar_lea.sflag [#allocation6], %s211_s11 }
  0x1c   : > { %s224_s28 = sshll.u32 %s215_s26, 4  ;;  %p677_p13 = pneg %p1005_p10  ;;  %s1018_s28 = int_to_ptr.vmem [resolvable:$true] %s224_s28 }
  0x20   : > { %s1015_s14 = scalar_lea.hbm %s1295_s1, %s1283_s8  ;;  %s680_s7 = scalar_lea.hbm %s1295_s1, 128 }
  0x21   : > { %s675_s30 = scalar_lea.hbm %s1015_s14, 128  ;;  %p681_p2 = scmp.lt.u32.totalorder %s1015_s14, %s1295_s1 }
  0x22   : > { %p676_p12 = scmp.ne.s32.totalorder %s1015_s14, %s675_s30  ;;  %p682_p5 = scmp.lt.u32.totalorder %s680_s7, %s675_s30 }
  0x23   : > { %p684_p7 = scmp.lt.u32.totalorder %s675_s30, %s1015_s14 }
  0x24   : > { %p678_p0 = pnand %p677_p13, %p676_p12  ;;  %p683_p6 = por %p682_p5, %p681_p2 }
  0x26   : > { %p679_p1 = pneg %p678_p0  ;;  %p685_p9 = por %p684_p7, %p683_p6 }
  0x28   : > { %p686_p3 = pnand %p685_p9, %p679_p1 }
  0x2a   : > { %689 = shalt.err (!%p686_p3)
}
  0x2b   : > { %s690_s11 = scalar_lea.vmem %s1018_s28, 128  ;;  %s889_s26 = smov [#allocation5]  }
  0x2c   : > { %p691_p12 = scmp.ne.s32.totalorder %s1018_s28, %s690_s11  ;;  %s695_s12 = sshll.u32 %s889_s26, 4  ;;  %s696_s12 = int_to_ptr.vmem [resolvable:$false] %s695_s12 }
  0x2d   : > { %s697_s5 = scalar_lea.vmem %s696_s12, 256  ;;  %p698_p11 = scmp.lt.s32.totalorder %s1018_s28, %s696_s12 }
  0x2e   : > { %p693_p0 = pnand %p691_p12, %p677_p13  ;;  %p699_p2 = scmp.lt.s32.totalorder %s697_s5, %s690_s11 }
  0x30   : > { %p694_p4 = pneg %p693_p0  ;;  %p700_p5 = por %p699_p2, %p698_p11 }
  0x32   : > { %p701_p7 = pnand %p700_p5, %p694_p4 }
  0x34   : > { %704 = shalt.err (!%p701_p7)
}
  0x35   : > { %577 = dma.hbm_to_vmem [thread:$0]  (!%p1005_p10), %s1015_s14, 128, %s1018_s28, %s1021_s29  }
  0x36   : > { %p263_p3 = scmp.lt.s32.totalorder %s887_s24, 3  ;;  %s1296_s7 = sshll.u32 %s975_s27, 7 }
  0x37   : > { %s1297_s0 = sld [smem:[#allocation15_spill]]  ;;  %p1298_p4 = scmp.ge.s32.totalorder %s887_s24, 1 }
  0x38   : > { %s195_s26 = scalar_lea.vmem [#allocation2], %s1001_s9  ;;  %s1300_s14 = sand.u32 1, %s883_s23  }
  0x39   : > { %p1059_p9 = pnand %p1298_p4, %p263_p3  ;;  %s204_s12 = sshll.u32 %s195_s26, 4  ;;  %s205_s12 = int_to_ptr.vmem [resolvable:$true] %s204_s12 }
  0x3a   : > { %s192_s28 = scalar_lea.sflag [#allocation3], %s1300_s14 }
  0x3b   : > { %s1299_s11 = scalar_select %p1059_p9, 1, 0 }
  0x3d   : > { %s1055_s13 = scalar_lea.hbm %s1297_s0, %s1296_s7  ;;  %s710_s8 = scalar_lea.hbm %s1297_s0, 128 }
  0x3e   : > { %s705_s27 = scalar_lea.hbm %s1055_s13, 128  ;;  %p711_p12 = scmp.lt.u32.totalorder %s1055_s13, %s1297_s0 }
  0x3f   : > { %p706_p11 = scmp.ne.s32.totalorder %s1055_s13, %s705_s27  ;;  %p712_p0 = scmp.lt.u32.totalorder %s710_s8, %s705_s27 }
  0x40   : > { %p714_p5 = scmp.lt.u32.totalorder %s705_s27, %s1055_s13 }
  0x41   : > { %p708_p1 = pnand %p706_p11, %p677_p13  ;;  %p713_p2 = por %p712_p0, %p711_p12 }
  0x43   : > { %p709_p6 = pneg %p708_p1  ;;  %p715_p7 = por %p714_p5, %p713_p2 }
  0x45   : > { %p716_p3 = pnand %p715_p7, %p709_p6 }
  0x47   : > { %719 = shalt.err (!%p716_p3)
}
  0x48   : > { %s720_s9 = scalar_lea.vmem %s205_s12, 128  ;;  %s890_s26 = smov [#allocation2]  }
  0x49   : > { %p721_p4 = scmp.ne.s32.totalorder %s205_s12, %s720_s9  ;;  %s725_s14 = sshll.u32 %s890_s26, 4  ;;  %s726_s14 = int_to_ptr.vmem [resolvable:$false] %s725_s14 }
  0x4a   : > { %s727_s5 = scalar_lea.vmem %s726_s14, 256  ;;  %p728_p9 = scmp.lt.s32.totalorder %s205_s12, %s726_s14 }
  0x4b   : > { %p723_p11 = pnand %p721_p4, %p677_p13  ;;  %p729_p8 = scmp.lt.s32.totalorder %s727_s5, %s720_s9 }
  0x4d   : > { %p724_p1 = pneg %p723_p11  ;;  %p730_p0 = por %p729_p8, %p728_p9 }
  0x4f   : > { %p731_p12 = pnand %p730_p0, %p724_p1 }
  0x51   : > { %734 = shalt.err (!%p731_p12)
}
  0x52   : > { %574 = dma.hbm_to_vmem [thread:$0]  (!%p1005_p10), %s1055_s13, 128, %s205_s12, %s192_s28  }
  0x53   : > { %s1086_s1 = sadd.s32 4294967295, %s887_s24   ;;  %s531_s10 = sadd.s32 4294967294, %s887_s24  }
  0x54   : > { %p48_p8 = scmp.eq.s32.totalorder %s1086_s1, 0  ;;  %p88_p13 = scmp.gt.s32.totalorder %s1086_s1, 0 }
  0x55   : > { %s533_s27 = sadd.s32 4294967295, %s969_s25  ;;  %p1301_p9 = scmp.ne.s32.totalorder %s879_s22, %s875_s21 }
  0x56   : > { %p91_p6 = scmp.gt.s32.totalorder %s533_s27, 0  ;;  %s96_s28 = sadd.s32 1, %s871_s20 }
  0x57   : > { %p1097_p10 = por %p48_p8, %p1301_p9  ;;  %p103_p2 = scmp.ne.s32.totalorder %s871_s20, %s867_s19 }
  0x58   : > { %s89_s12 = scalar_select %p88_p13, %s1086_s1, 0 }
  0x59   : > { %s1328_s27 = smov (!%p91_p6, %s533_s27), 0  ;;  %p109_p5 = scmp.ne.s32.totalorder %s867_s19, %s863_s18 }
  0x5a   : > { %s93_s7 = ssub.s32 %s89_s12, %s1328_s27  ;;  %p1303_p3 = scmp.eq.s32.totalorder %s887_s24, 0 }
  0x5b   : > { %p94_p7 = scmp.eq.s32.totalorder %s93_s7, 0  ;;  %p1115_p11 = por %p109_p5, %p48_p8 }
  0x5c   : > { %p1109_p4 = por %p103_p2, %p1303_p3  ;;  %s154_s30 = sadd.s32 1, %s859_s17 }
  0x5d   : > { %s1305_s8 = scalar_select %p1115_p11, 1, 0 }
  0x5e   : > { %s1121_s9 = scalar_select %p94_p7, %s871_s20, %s96_s28  }
  0x5f   : > { %p1306_p1 = scmp.ne.s32.totalorder %s1293_s6, 0  ;;  %p164_p0 = scmp.ne.s32.totalorder %s859_s17, %s855_s16 }
  0x60   : > { %p165_p12 = scmp.eq.s32.totalorder %s1086_s1, 1  ;;  %p170_p13 = scmp.ne.s32.totalorder %s855_s16, %s851_s15 }
  0x61   : > { %s1126_s26 = scalar_select %p1306_p1, %s859_s17, %s154_s30  }
  0x62   : > { %p171_p9 = scmp.eq.s32.totalorder %s531_s10, 1  ;;  %p1133_p6 = por %p165_p12, %p164_p0 }
  0x63   : > { %s233_s14 = sand.u32 1, %s871_s20   ;;  %s544_s7 = sshll.u32 %s89_s12, 7 }
  0x64   : > { %s1307_s18 = scalar_select %p1133_p6, 1, 0 }
  0x65   : > { %p1138_p8 = por %p171_p9, %p170_p13  ;;  %s542_s27 = sshll.u32 %s233_s14, 3 }
  0x66   : > { %s1145_s6 = scalar_lea.hbm %s1279_s2, %s544_s7  ;;  %s235_s10 = scalar_lea.vmem [#allocation7], %s542_s27 }
  0x67   : > { %s1308_s5 = scalar_select %p1138_p8, 1, 0 }
  0x68   : > { %s245_s30 = sshll.u32 %s235_s10, 4  ;;  %p1309_p2 = scmp.lt.s32.totalorder %s887_s24, 2  ;;  %s1147_s30 = int_to_ptr.vmem [resolvable:$true] %s245_s30 }
  0x69   : > { %s735_s12 = scalar_lea.hbm %s1145_s6, 128  ;;  %s740_s27 = scalar_lea.hbm %s1279_s2, 128 }
  0x6a   : > { %p1153_p5 = pnand %p1309_p2, %p1109_p4  ;;  %p736_p7 = scmp.ne.s32.totalorder %s1145_s6, %s735_s12 }
  0x6b   : > { %p741_p4 = scmp.lt.u32.totalorder %s1145_s6, %s1279_s2  ;;  %p742_p12 = scmp.lt.u32.totalorder %s740_s27, %s735_s12 }
  0x6c   : > { %p737_p3 = pneg %p1153_p5  ;;  %p744_p9 = scmp.lt.u32.totalorder %s735_s12, %s1145_s6 }
  0x6d   : > { %p743_p13 = por %p742_p12, %p741_p4 }
  0x6e   : > { %p738_p1 = pnand %p737_p3, %p736_p7 }
  0x6f   : > { %p745_p2 = por %p744_p9, %p743_p13 }
  0x70   : > { %p739_p0 = pneg %p738_p1 }
  0x72   : > { %p746_p8 = pnand %p745_p2, %p739_p0 }
  0x74   : > { %749 = shalt.err (!%p746_p8)
}
  0x75   : > { %s750_s28 = scalar_lea.vmem %s1147_s30, 128  ;;  %s891_s10 = smov [#allocation7]  }
  0x76   : > { %p751_p7 = scmp.ne.s32.totalorder %s1147_s30, %s750_s28  ;;  %s755_s0 = sshll.u32 %s891_s10, 4  ;;  %s756_s0 = int_to_ptr.vmem [resolvable:$false] %s755_s0 }
  0x77   : > { %s757_s14 = scalar_lea.vmem %s756_s0, 256  ;;  %p758_p11 = scmp.lt.s32.totalorder %s1147_s30, %s756_s0 }
  0x78   : > { %p753_p1 = pnand %p751_p7, %p737_p3  ;;  %p759_p4 = scmp.lt.s32.totalorder %s757_s14, %s750_s28 }
  0x7a   : > { %p754_p6 = pneg %p753_p1  ;;  %p760_p12 = por %p759_p4, %p758_p11 }
  0x7c   : > { %p761_p13 = pnand %p760_p12, %p754_p6 }
  0x7e   : > { %764 = shalt.err (!%p761_p13)
}
  0x7f   : > { %580 = dma.hbm_to_vmem [thread:$0]  (!%p1153_p5), %s1145_s6, 128, %s1147_s30, %s1021_s29  }
  0x80   : > { %p1311_p8 = scmp.ne.s32.totalorder %s1299_s11, 0 }
  0x81   : > { %s269_s12 = sand.u32 (!%p1311_p8), 1, %s879_s22  }
  0x82   : > { %267 = sbr.rel (%p1311_p8) target bundleno = 226 (0xe2), region = 36  ;;  %s546_s27 = sshll.u32 (!%p1311_p8), %s269_s12, 3 }
  0x83   : > { %s270_s21 = scalar_lea.sflag (!%p1311_p8), [#allocation3], %s269_s12  ;;  %s273_s7 = scalar_lea.vmem (!%p1311_p8), [#allocation2], %s546_s27 }
  0x89   : > { %834 = dma.done.wait (%p1097_p10), %s270_s21, 128  }
  0x8a   : > { %836 = vsyncadd (%p1097_p10), %s270_s21, 4294967168  ;;  %s278_s23 = sand.u32 1, %s1086_s1   ;;  %s282_s10 = scalar_lea.vmem [#allocation5], %s546_s27 }
  0x8b   : > { %s279_s28 = scalar_lea.sflag [#allocation6], %s278_s23 }
  0x8c   : > { %838 = dma.done.wait (%p1097_p10), %s279_s28, 128  }
  0x8d   : > { %840 = vsyncadd (%p1097_p10), %s279_s28, 4294967168  ;;  %s289_s29 = sand.u32 1, %s867_s19   ;;  %p1312_p11 = scmp.ne.s32.totalorder %s1305_s8, 0 }
  0x8e   : > { %s1196_s11 = sshll.u32 %s289_s29, 3 }
  0x8f   : > { %s291_s6 = scalar_lea.vmem [#allocation7], %s1196_s11 }
  0x90   : > { %842 = dma.done.wait (%p1312_p11), %s279_s28, 128  }
  0x91   : > { %844 = vsyncadd (%p1312_p11), %s279_s28, 4294967168  ;;  %s330_s30 = sand.u32 1, %s855_s16   ;;  %p557_p10 = scmp.ge.s32.totalorder %s1086_s1, 1 }
  0x92   : > { %s549_s0 = sshll.u32 %s330_s30, 3  ;;  %v354_v0 = vld [vmem:[%s273_s7] sm:$0xff] (!%p557_p10)  ;;  %v355_v3 = vld [vmem:[%s282_s10] sm:$0xff] (!%p557_p10) }
  0x93   : > { %s1206_s14 = scalar_lea.vmem [#allocation8], %s549_s0  ;;  %353 = sbr.rel (%p557_p10) target bundleno = 173 (0xad), region = 52  ;;  %667 = vlog2.f32 (!%p557_p10), %v354_v0  ;;  %v359_v1 = vsub.f32 (!%p557_p10), 1.0, %v354_v0  ;;  %v364_v8 = vsub.f32 (!%p557_p10), 1.0, %v355_v3 }
  0x95   : > { %669 = vlog2.f32 (!%p557_p10), %v359_v1 }
  0x9d   : > { %v668_v2 = vpop.eup %667 }
  0x9e   : > { %v357_v4 = vmul.f32 0.6931472, %v668_v2 }
  0x9f   : > { %v670_v5 = vpop.eup %669 }
  0xa0   : > { %v358_v6 = vmax.f32 %v357_v4, -100.0  ;;  %v361_v7 = vmul.f32 0.6931472, %v670_v5 }
  0xa2   : > { %v362_v9 = vmax.f32 %v361_v7, -100.0  ;;  %v363_v10 = vmul.f32 %v358_v6, %v355_v3 }
  0xa4   : > { %v365_v11 = vmul.f32 %v364_v8, %v362_v9 }
  0xa6   : > { %v366_v12 = vadd.f32 %v365_v11, %v363_v10 }
  0xa8   : > { %v367_v13 = vsub.f32 0.0, %v366_v12 }
  0xaa   : > { %v368_v14 = vmul.f32 0.0052083335, %v367_v13 }
  0xac   : > { %370 = vst [vmem:[%s1206_s14] sm:$0xff] %v368_v14 }
  0xad PF: > { %p558_p6 = scmp.lt.s32.totalorder %s1086_s1, 1 }
  0xae   : > { %v375_v15 = vld [vmem:[%s291_s6] sm:$0xff] (!%p558_p6) }
  0xaf   : > { %374 = sbr.rel (%p558_p6) target bundleno = 201 (0xc9), region = 56  ;;  %671 = vlog2.f32 (!%p558_p6), %v375_v15  ;;  %v380_v16 = vsub.f32 (!%p558_p6), 1.0, %v375_v15  ;;  %v376_v18 = vld [vmem:[%s1280_s3] sm:$0xff] (!%p558_p6) }
  0xb0   : > { %v385_v23 = vsub.f32 (!%p558_p6), 1.0, %v376_v18 }
  0xb1   : > { %673 = vlog2.f32 (!%p558_p6), %v380_v16 }
  0xb9   : > { %v672_v17 = vpop.eup %671 }
  0xba   : > { %v378_v19 = vmul.f32 0.6931472, %v672_v17 }
  0xbb   : > { %v674_v20 = vpop.eup %673 }
  0xbc   : > { %v379_v21 = vmax.f32 %v378_v19, -100.0  ;;  %v382_v22 = vmul.f32 0.6931472, %v674_v20 }
  0xbe   : > { %v383_v24 = vmax.f32 %v382_v22, -100.0  ;;  %v384_v25 = vmul.f32 %v379_v21, %v376_v18 }
  0xc0   : > { %v386_v26 = vmul.f32 %v385_v23, %v383_v24 }
  0xc2   : > { %v387_v27 = vadd.f32 %v386_v26, %v384_v25 }
  0xc4   : > { %v388_v28 = vsub.f32 0.0, %v387_v27 }
  0xc6   : > { %v389_v29 = vmul.f32 0.015625, %v388_v28 }
  0xc8   : > { %391 = vst [vmem:[%s1206_s14] sm:$0xff] %v389_v29 }
  0xc9 PF: > { %s560_s12 = sshll.u32 %s1086_s1, 7  ;;  %s406_s23 = sshll.u32 %s1206_s14, 4  ;;  %s407_s23 = int_to_ptr.vmem [resolvable:$true] %s406_s23 }
  0xca   : > { %s1219_s7 = scalar_lea.hbm %s1281_s4, %s560_s12  ;;  %s393_s28 = scalar_lea.sflag [#allocation4], %s330_s30 }
  0xcb   : > { %s765_s10 = scalar_lea.vmem %s407_s23, 128  ;;  %p1313_p3 = scmp.ne.s32.totalorder %s1307_s18, 0 }
  0xcc   : > { %p766_p5 = scmp.ne.s32.totalorder %s407_s23, %s765_s10  ;;  %s892_s29 = smov [#allocation8]  }
  0xcd   : > { %s769_s11 = sshll.u32 %s892_s29, 4  ;;  %s770_s11 = int_to_ptr.vmem [resolvable:$false] %s769_s11 }
  0xce   : > { %p767_p0 = pnand %p766_p5, %p1313_p3  ;;  %s771_s6 = scalar_lea.vmem %s770_s11, 256 }
  0xcf   : > { %p772_p2 = scmp.lt.s32.totalorder %s407_s23, %s770_s11  ;;  %p773_p7 = scmp.lt.s32.totalorder %s771_s6, %s765_s10 }
  0xd0   : > { %p768_p9 = pneg %p767_p0 }
  0xd1   : > { %p774_p1 = por %p773_p7, %p772_p2 }
  0xd3   : > { %p775_p4 = pnand %p774_p1, %p768_p9 }
  0xd5   : > { %778 = shalt.err (!%p775_p4)
}
  0xd6   : > { %s779_s1 = scalar_lea.hbm %s1219_s7, 128  ;;  %s783_s14 = scalar_lea.hbm %s1281_s4, 256 }
  0xd7   : > { %p780_p12 = scmp.ne.s32.totalorder %s1219_s7, %s779_s1  ;;  %p784_p11 = scmp.lt.u32.totalorder %s1219_s7, %s1281_s4 }
  0xd8   : > { %p785_p10 = scmp.lt.u32.totalorder %s783_s14, %s779_s1  ;;  %p787_p5 = scmp.lt.u32.totalorder %s779_s1, %s1219_s7 }
  0xd9   : > { %p781_p13 = pnand %p780_p12, %p1313_p3 }
  0xda   : > { %p786_p6 = por %p785_p10, %p784_p11 }
  0xdb   : > { %p782_p8 = pneg %p781_p13 }
  0xdc   : > { %p788_p0 = por %p787_p5, %p786_p6 }
  0xde   : > { %p789_p9 = pnand %p788_p0, %p782_p8 }
  0xe0   : > { %792 = shalt.err (!%p789_p9)
}
  0xe1   : > { %569 = dma.vmem_to_hbm [thread:$0]  (%p1313_p3), %s407_s23, 128, %s1219_s7, %s393_s28  }
  0xe2 PF: > { %s418_s12 = sand.u32 1, %s851_s15   ;;  %p1314_p2 = scmp.ne.s32.totalorder %s1308_s5, 0 }
  0xe3   : > { %p1315_p7 = scmp.ge.s32.totalorder %s887_s24, 2  ;;  %s419_s27 = scalar_lea.sflag [#allocation4], %s418_s12 }
  0xe5   : > { %p582_p1 = pnand %p1315_p7, %p1314_p2 }
  0xe7   : > { %846 = dma.done.wait (!%p582_p1), %s419_s27, 128  }
  0xe8   : > { %848 = vsyncadd (!%p582_p1), %s419_s27, 4294967168  ;;  %s1316_s7 = sld [smem:[#allocation13_spill]]  ;;  %s1317_s23 = sld [smem:[#allocation14_spill]] }
  0xe9   : > { %p20_p3 = scmp.ge.s32.totalorder %s969_s25, 4   ;;  %s1318_s15 = smov %s855_s16 }
  0xea   : > { %s1319_s16 = smov %s859_s17  ;;  %s1320_s17 = smov %s1126_s26 }
  0xeb   : > { %s1321_s18 = smov %s867_s19  ;;  %s1322_s19 = smov %s871_s20 }
  0xec   : > { %s1323_s20 = smov %s1121_s9  ;;  %s1324_s21 = smov %s879_s22 }
  0xed   : > { %s1326_s24 = smov %s969_s25  ;;  %22 = sbr.rel (!%p20_p3) target bundleno = 13 (0xd), region = 116 }
  0xee   : > { %s1325_s22 = smov %s1316_s7 }
  0xf4   :  { %424 = vsyncpa [#allocation3], 1 }
  0xf5   :  { %426 = vsyncpa [#allocation3 + $0x1], 1 }
  0xf6   :  { %427 = vsyncpa [#allocation6], 1 }
  0xf7   :  { %429 = vsyncpa [#allocation6 + $0x1], 1 }
  0xf8   :  { %430 = vsyncpa [#allocation4], 1 }
  0xf9   :  { %432 = vsyncpa [#allocation4 + $0x1], 1 }

</bundles_post_ra>
